<compile_context>
chip_gen: v5e
topology: v5e:2x2
jax: 0.10.0
libtpu: 0.0.40
codegen_flags: <defaults>
</compile_context>

<pallas_src>
import jax
import jax.numpy as jnp
import numpy as np
from jax import lax
from jax.experimental import pallas as pl
from jax.experimental.pallas import tpu as pltpu


def _round_up(x, m):
    return ((x + m - 1) // m) * m


def _pick_chunk(L, target=512):
    """Largest lane-chunk <= target that is a multiple of 128 and divides L."""
    if L <= target:
        return L
    for c in range(target, 127, -128):
        if L % c == 0:
            return c
    return L  # fallback: single chunk (correct, may spill for huge L)


def _tpu_generation():
    """(physical_vmem_bytes, tensorcores_per_chip), conservative fallbacks."""
    vmem = None
    try:
        info = pltpu.get_tpu_info()
        v = getattr(info, "vmem_capacity_bytes", None)
        if isinstance(v, (int, np.integer)) and v > 0:
            vmem = int(v)
    except Exception:
        vmem = None
    kind = ""
    try:
        kind = jax.devices()[0].device_kind.lower()
    except Exception:
        kind = ""
    is_v7 = "v7" in kind
    if vmem is None:
        # v7x has 64 MiB / TC; v5e/v6e have 128 MiB.  Unknown -> conservative.
        vmem = (64 << 20) if (is_v7 or not kind) else (128 << 20)
    cores = 2 if is_v7 else 1
    return vmem, cores


def _derived_dims(block_b, C, W):
    CW = C * W
    L = block_b * CW
    BC = block_b * C
    BCp = _round_up(BC, 128)
    NB = _round_up(block_b, 128)
    if NB > 128:
        NB = _round_up(NB, 256)   # fill the 256-wide MXU N dim on v6e/v7x
    return L, BC, BCp, NB


def _vmem_estimate(block_b, C, H, W, in_itemsize):
    """Rough per-step VMEM footprint (inputs x 2 bufs, output, P/Q, temps)."""
    L, _, BCp, NB = _derived_dims(block_b, C, W)
    chunk = _pick_chunk(L)
    inputs = 2 * 2 * H * L * in_itemsize          # 2 inputs x 2 pipeline bufs
    outputs = 2 * H * NB * 4
    consts = 2 * (L * BCp + BCp * NB) * 4         # P and Q (count 2 bufs)
    temps = 6 * H * chunk * 4 + 2 * H * BCp * 4 + 4 * BCp * 4
    return inputs + outputs + consts + temps


def _choose_block_b(B, C, H, W, in_itemsize, vmem_bytes, num_cores,
                    target_lanes=4096):
    CW = C * W
    budget = int(vmem_bytes * 0.55)               # headroom below physical VMEM
    bb = max(1, min(B, -(-target_lanes // CW)))   # 2K-8K lane target
    while bb > 1 and _vmem_estimate(bb, C, H, W, in_itemsize) > budget:
        bb = max(1, bb - max(1, bb // 8))
    # Only split the grid on multi-TensorCore chips (v7x); on v5e/v6e the grid
    # is a serial loop so splitting is pure overhead.
    if num_cores > 1:
        G = -(-B // bb)
        if G < num_cores:
            cand = -(-B // num_cores)
            if cand >= 1 and cand * CW >= 128:    # keep lanes >= 128
                bb = cand
    return bb


def _make_circorr_kernel(H, L, BCp, chunk, max_unroll_h=32):
    n_chunks = L // chunk
    assert n_chunks * chunk == L
    inv_sqrt_h = float(1.0 / np.sqrt(H))

    def _roll_sub(x, s):
        # Single XLU sublane rotate; jnp.roll fallback for odd sublane extents.
        if H % 8 == 0:
            return pltpu.roll(x, s, axis=0)
        return jnp.roll(x, s, axis=0)

    def kernel(x1_ref, x2_ref, p_ref, q_ref, out_ref):
        f32 = jnp.float32
        # Small group-level accumulators carried across lane chunks.
        g_acc = jnp.zeros((2, BCp), f32)      # squared-norm sums per (b, c)
        mag_g = jnp.zeros((H, BCp), f32)      # |corr| sums per (b, c)

        for ci in range(n_chunks):
            c0 = ci * chunk
            x1c = x1_ref[0, :, c0:c0 + chunk].astype(f32)   # (H, chunk)
            x2c = x2_ref[0, :, c0:c0 + chunk].astype(f32)   # (H, chunk)
            pc = p_ref[c0:c0 + chunk, :]                    # (chunk, BCp)

            # Squared-norm group sums (F.normalize over (H, W)); both inputs
            # fused into one (2, chunk) @ (chunk, BCp) MXU matmul.
            ss = jnp.concatenate(
                [jnp.sum(x1c * x1c, axis=0, keepdims=True),
                 jnp.sum(x2c * x2c, axis=0, keepdims=True)], axis=0)
            g_acc = g_acc + jnp.dot(ss, pc, preferred_element_type=f32)

            # Circular correlation along H (ortho FFT pair -> 1/sqrt(H) later):
            #   acc[n, l] = sum_k x2[k, l] * x1[(n + k) % H, l]
            # Accumulator stays register resident for the whole chunk.
            if H <= max_unroll_h:
                acc = x2c[0:1, :] * x1c
                for k in range(1, H):
                    acc = acc + x2c[k:k + 1, :] * _roll_sub(x1c, H - k)
            else:
                def k_body(_, carry):
                    a, x1r, x2r = carry
                    a = a + x2r[0:1, :] * x1r
                    return (a, _roll_sub(x1r, H - 1), _roll_sub(x2r, H - 1))
                acc, _, _ = lax.fori_loop(
                    0, H, k_body, (jnp.zeros_like(x1c), x1c, x2c), unroll=4)

            # sqrt(v^2 + 1e-15) == abs(v) to ~3e-8 (purely real math).
            mag_g = mag_g + jnp.dot(jnp.abs(acc), pc,
                                    preferred_element_type=f32)

        # Deferred normalization at group granularity; 1/sqrt(H) folded in.
        # Padded groups / zero-padded batch rows have mag_g == 0 exactly, so
        # the huge rsqrt(eps) factor there is harmless (0 * finite = 0).
        eps2 = jnp.float32(1e-24)          # (F.normalize eps = 1e-12)^2
        cg = (lax.rsqrt(jnp.maximum(g_acc[0:1, :], eps2))
              * lax.rsqrt(jnp.maximum(g_acc[1:2, :], eps2))
              * jnp.float32(inv_sqrt_h))                     # (1, BCp)

        corr = jnp.dot(mag_g * cg, q_ref[...],
                       preferred_element_type=jnp.float32)   # (H, NB)
        out_ref[...] = corr[None]

    return kernel


def circorr2_forward(x1, x2, scale=1, block_b=None):
    """Pallas equivalent of circorr2(is_circular=True, zero_mean_normalize=False).

    Returns (corr_fftshifted [B, H], score [B], shift [B]).
    """
    assert x1.shape == x2.shape, "Images must be of the same size."
    # TODO(synk): curve_smoothing (FFT zero-pad upsampling, scale != 1) not implemented.
    assert scale == 1
    B, C, H, W = x1.shape
    CW = C * W

    vmem_bytes, num_cores = _tpu_generation()
    in_itemsize = jnp.dtype(x1.dtype).itemsize
    if block_b is None:
        block_b = _choose_block_b(B, C, H, W, in_itemsize, vmem_bytes, num_cores)
    block_b = max(1, min(block_b, B))

    G = -(-B // block_b)
    B_pad = G * block_b
    L, BC, BCp, NB = _derived_dims(block_b, C, W)
    chunk = _pick_chunk(L)

    # Constant 0/1 selection matrices, hoisted out of the kernel (DMA'd once,
    # resident across grid steps thanks to the constant index_map).
    lane_group = np.arange(L) // W                     # lane -> (b*C + c) group
    P = (lane_group[:, None] == np.arange(BCp)[None, :]).astype(np.float32)
    grp = np.arange(BCp)
    Q = ((grp[:, None] < BC)
         & ((grp[:, None] // C) == np.arange(NB)[None, :])).astype(np.float32)
    P = jnp.asarray(P)
    Q = jnp.asarray(Q)

    def to_lane_dense(x):
        if B_pad != B:
            x = jnp.pad(x, ((0, B_pad - B), (0, 0), (0, 0), (0, 0)))
        x = x.reshape(G, block_b, C, H, W)
        x = jnp.transpose(x, (0, 3, 1, 2, 4))          # (G, H, block_b, C, W)
        return x.reshape(G, H, L)

    x1r = to_lane_dense(x1)
    x2r = to_lane_dense(x2)

    kernel = _make_circorr_kernel(H=H, L=L, BCp=BCp, chunk=chunk)

    est = _vmem_estimate(block_b, C, H, W, in_itemsize)
    vmem_limit = int(min(vmem_bytes * 0.75, max(2 * est, 32 << 20)))

    out = pl.pallas_call(
        kernel,
        out_shape=jax.ShapeDtypeStruct((G, H, NB), jnp.float32),
        grid_spec=pltpu.PrefetchScalarGridSpec(
            num_scalar_prefetch=0,
            grid=(G,),
            in_specs=[
                pl.BlockSpec((1, H, L), lambda g: (g, 0, 0)),
                pl.BlockSpec((1, H, L), lambda g: (g, 0, 0)),
                pl.BlockSpec((L, BCp), lambda g: (0, 0)),     # P: resident
                pl.BlockSpec((BCp, NB), lambda g: (0, 0)),    # Q: resident
            ],
            out_specs=pl.BlockSpec((1, H, NB), lambda g: (g, 0, 0)),
        ),
        compiler_params=pltpu.CompilerParams(
            dimension_semantics=("parallel",),
            vmem_limit_bytes=vmem_limit,
            # Let XLA fuse the lane-dense transpose/reshape producers of the
            # two image operands into the call (avoids an extra HBM pass).
            allow_input_fusion=[True, True, False, False],
        ),
    )(x1r, x2r, P, Q)

    # Un-pad / re-layout back to (B, H) in plain JAX (tiny).
    corr = out[:, :, :block_b]                                   # (G, H, block_b)
    corr = jnp.transpose(corr, (0, 2, 1)).reshape(B_pad, H)[:B]  # (B, H)

    score = jnp.max(corr, axis=-1) / (0.15 * C * H * W)          # [B]
    corr_shifted = jnp.roll(corr, H // 2, axis=-1)               # fftshift(dim=-1)
    shift = H // 2 - jnp.argmax(corr_shifted, axis=-1)           # [B]
    return corr_shifted, score, shift


def _reference_fft(x1, x2):
    """Pure-JAX reference mirroring the torch FFT implementation."""
    B, C, H, W = x1.shape
    n1 = jnp.sqrt(jnp.sum(x1 * x1, axis=(2, 3), keepdims=True))
    n2 = jnp.sqrt(jnp.sum(x2 * x2, axis=(2, 3), keepdims=True))
    x1n = x1 / jnp.maximum(n1, 1e-12)
    x2n = x2 / jnp.maximum(n2, 1e-12)
    a = jnp.fft.fft(x1n, axis=2, norm="ortho")
    b = jnp.fft.fft(x2n, axis=2, norm="ortho")
    corr = jnp.fft.ifft(a * jnp.conj(b), axis=2, norm="ortho")
    corr = jnp.sqrt(corr.real ** 2 + corr.imag ** 2 + 1e-15)
    corr = jnp.sum(corr, axis=1)
    corr = jnp.sum(corr, axis=-1)
    score = jnp.max(corr, axis=-1) / (0.15 * C * H * W)
    corr = jnp.fft.fftshift(corr, axes=-1)
    shift = H // 2 - jnp.argmax(corr, axis=-1)
    return corr, score, shift


if __name__ == "__main__":
    key = jax.random.PRNGKey(0)
    k1, k2 = jax.random.split(key)
    B, C, H, W = 2, 4, 16, 16
    x1 = jax.random.normal(k1, (B, C, H, W), dtype=jnp.float32)
    x2 = jax.random.normal(k2, (B, C, H, W), dtype=jnp.float32)

    fwd = jax.jit(circorr2_forward)
    corr, score, shift = fwd(x1, x2)
    jax.block_until_ready((corr, score, shift))

    ref_corr, ref_score, _ = _reference_fft(x1, x2)
    np.testing.assert_allclose(np.asarray(corr), np.asarray(ref_corr),
                               rtol=1e-3, atol=1e-3)
    np.testing.assert_allclose(np.asarray(score), np.asarray(ref_score),
                               rtol=1e-3, atol=1e-3)
    print("KERNEL_OK")
</pallas_src>

<mosaic_0001>
module attributes {stable_mosaic.version = 11 : i64} {
  func.func @kernel(%arg0: i32, %arg1: memref<1x16x128xf32, #tpu.memory_space<vmem>>, %arg2: memref<1x16x128xf32, #tpu.memory_space<vmem>>, %arg3: memref<128x128xf32, #tpu.memory_space<vmem>>, %arg4: memref<128x128xf32, #tpu.memory_space<vmem>>, %arg5: memref<1x16x128xf32, #tpu.memory_space<vmem>>) attributes {dimension_semantics = [#tpu.dimension_semantics<parallel>], iteration_bounds = array<i64: 1>, scalar_prefetch = 0 : i64, scratch_operands = 0 : i64, tpu.core_type = #tpu.core_type<tc>, window_params = [{transform_indices = @transform_0, window_bounds = array<i64: 1, 16, 128>}, {transform_indices = @transform_1, window_bounds = array<i64: 1, 16, 128>}, {pipeline_mode = #tpu.pipeline_mode<synchronous>, transform_indices = @transform_2, window_bounds = array<i64: 128, 128>}, {pipeline_mode = #tpu.pipeline_mode<synchronous>, transform_indices = @transform_3, window_bounds = array<i64: 128, 128>}, {transform_indices = @transform_4, window_bounds = array<i64: 1, 16, 128>}]} {
    %cst = arith.constant 0.000000e+00 : f32
    %0 = vector.broadcast %cst : f32 to vector<2x128xf32>
    %cst_0 = arith.constant 0.000000e+00 : f32
    %1 = vector.broadcast %cst_0 : f32 to vector<16x128xf32>
    %c0 = arith.constant 0 : index
    %c0_1 = arith.constant 0 : index
    %c0_2 = arith.constant 0 : index
    %2 = vector.load %arg1[%c0, %c0_1, %c0_2] : memref<1x16x128xf32, #tpu.memory_space<vmem>>, vector<1x16x128xf32>
    %3 = vector.shape_cast %2 : vector<1x16x128xf32> to vector<16x128xf32>
    %c0_3 = arith.constant 0 : index
    %c0_4 = arith.constant 0 : index
    %c0_5 = arith.constant 0 : index
    %4 = vector.load %arg2[%c0_3, %c0_4, %c0_5] : memref<1x16x128xf32, #tpu.memory_space<vmem>>, vector<1x16x128xf32>
    %5 = vector.shape_cast %4 : vector<1x16x128xf32> to vector<16x128xf32>
    %c0_6 = arith.constant 0 : index
    %c0_7 = arith.constant 0 : index
    %6 = vector.load %arg3[%c0_6, %c0_7] : memref<128x128xf32, #tpu.memory_space<vmem>>, vector<128x128xf32>
    %7 = arith.mulf %3, %3 : vector<16x128xf32>
    %cst_8 = arith.constant dense<0.000000e+00> : vector<128xf32>
    %8 = vector.multi_reduction <add>, %7, %cst_8 [0] : vector<16x128xf32> to vector<128xf32>
    %9 = vector.shape_cast %8 : vector<128xf32> to vector<1x128xf32>
    %10 = arith.mulf %5, %5 : vector<16x128xf32>
    %cst_9 = arith.constant dense<0.000000e+00> : vector<128xf32>
    %11 = vector.multi_reduction <add>, %10, %cst_9 [0] : vector<16x128xf32> to vector<128xf32>
    %12 = vector.shape_cast %11 : vector<128xf32> to vector<1x128xf32>
    %13 = tpu.concatenate %9, %12 in 0 : vector<1x128xf32>, vector<1x128xf32> -> vector<2x128xf32>
    %cst_10 = arith.constant dense<0.000000e+00> : vector<2x128xf32>
    %14 = tpu.matmul %13, %6, %cst_10 {dimension_numbers = #tpu.dot_dimension_numbers<[1], [0], [0], [1], [0, 0, 1, 1], [], []>} : vector<2x128xf32>, vector<128x128xf32>, vector<2x128xf32> -> vector<2x128xf32>
    %15 = arith.addf %0, %14 : vector<2x128xf32>
    %16 = vector.extract_strided_slice %5 {offsets = [0, 0], sizes = [1, 128], strides = [1, 1]} : vector<16x128xf32> to vector<1x128xf32>
    %17 = vector.broadcast %16 : vector<1x128xf32> to vector<16x128xf32>
    %18 = arith.mulf %17, %3 : vector<16x128xf32>
    %19 = vector.extract_strided_slice %5 {offsets = [1, 0], sizes = [1, 128], strides = [1, 1]} : vector<16x128xf32> to vector<1x128xf32>
    %c15_i32 = arith.constant 15 : i32
    %20 = tpu.dynamic_rotate %3 by %c15_i32 dim 0 : vector<16x128xf32>, i32 -> vector<16x128xf32>
    %21 = vector.broadcast %19 : vector<1x128xf32> to vector<16x128xf32>
    %22 = arith.mulf %21, %20 : vector<16x128xf32>
    %23 = arith.addf %18, %22 : vector<16x128xf32>
    %24 = vector.extract_strided_slice %5 {offsets = [2, 0], sizes = [1, 128], strides = [1, 1]} : vector<16x128xf32> to vector<1x128xf32>
    %c14_i32 = arith.constant 14 : i32
    %25 = tpu.dynamic_rotate %3 by %c14_i32 dim 0 : vector<16x128xf32>, i32 -> vector<16x128xf32>
    %26 = vector.broadcast %24 : vector<1x128xf32> to vector<16x128xf32>
    %27 = arith.mulf %26, %25 : vector<16x128xf32>
    %28 = arith.addf %23, %27 : vector<16x128xf32>
    %29 = vector.extract_strided_slice %5 {offsets = [3, 0], sizes = [1, 128], strides = [1, 1]} : vector<16x128xf32> to vector<1x128xf32>
    %c13_i32 = arith.constant 13 : i32
    %30 = tpu.dynamic_rotate %3 by %c13_i32 dim 0 : vector<16x128xf32>, i32 -> vector<16x128xf32>
    %31 = vector.broadcast %29 : vector<1x128xf32> to vector<16x128xf32>
    %32 = arith.mulf %31, %30 : vector<16x128xf32>
    %33 = arith.addf %28, %32 : vector<16x128xf32>
    %34 = vector.extract_strided_slice %5 {offsets = [4, 0], sizes = [1, 128], strides = [1, 1]} : vector<16x128xf32> to vector<1x128xf32>
    %c12_i32 = arith.constant 12 : i32
    %35 = tpu.dynamic_rotate %3 by %c12_i32 dim 0 : vector<16x128xf32>, i32 -> vector<16x128xf32>
    %36 = vector.broadcast %34 : vector<1x128xf32> to vector<16x128xf32>
    %37 = arith.mulf %36, %35 : vector<16x128xf32>
    %38 = arith.addf %33, %37 : vector<16x128xf32>
    %39 = vector.extract_strided_slice %5 {offsets = [5, 0], sizes = [1, 128], strides = [1, 1]} : vector<16x128xf32> to vector<1x128xf32>
    %c11_i32 = arith.constant 11 : i32
    %40 = tpu.dynamic_rotate %3 by %c11_i32 dim 0 : vector<16x128xf32>, i32 -> vector<16x128xf32>
    %41 = vector.broadcast %39 : vector<1x128xf32> to vector<16x128xf32>
    %42 = arith.mulf %41, %40 : vector<16x128xf32>
    %43 = arith.addf %38, %42 : vector<16x128xf32>
    %44 = vector.extract_strided_slice %5 {offsets = [6, 0], sizes = [1, 128], strides = [1, 1]} : vector<16x128xf32> to vector<1x128xf32>
    %c10_i32 = arith.constant 10 : i32
    %45 = tpu.dynamic_rotate %3 by %c10_i32 dim 0 : vector<16x128xf32>, i32 -> vector<16x128xf32>
    %46 = vector.broadcast %44 : vector<1x128xf32> to vector<16x128xf32>
    %47 = arith.mulf %46, %45 : vector<16x128xf32>
    %48 = arith.addf %43, %47 : vector<16x128xf32>
    %49 = vector.extract_strided_slice %5 {offsets = [7, 0], sizes = [1, 128], strides = [1, 1]} : vector<16x128xf32> to vector<1x128xf32>
    %c9_i32 = arith.constant 9 : i32
    %50 = tpu.dynamic_rotate %3 by %c9_i32 dim 0 : vector<16x128xf32>, i32 -> vector<16x128xf32>
    %51 = vector.broadcast %49 : vector<1x128xf32> to vector<16x128xf32>
    %52 = arith.mulf %51, %50 : vector<16x128xf32>
    %53 = arith.addf %48, %52 : vector<16x128xf32>
    %54 = vector.extract_strided_slice %5 {offsets = [8, 0], sizes = [1, 128], strides = [1, 1]} : vector<16x128xf32> to vector<1x128xf32>
    %c8_i32 = arith.constant 8 : i32
    %55 = tpu.dynamic_rotate %3 by %c8_i32 dim 0 : vector<16x128xf32>, i32 -> vector<16x128xf32>
    %56 = vector.broadcast %54 : vector<1x128xf32> to vector<16x128xf32>
    %57 = arith.mulf %56, %55 : vector<16x128xf32>
    %58 = arith.addf %53, %57 : vector<16x128xf32>
    %59 = vector.extract_strided_slice %5 {offsets = [9, 0], sizes = [1, 128], strides = [1, 1]} : vector<16x128xf32> to vector<1x128xf32>
    %c7_i32 = arith.constant 7 : i32
    %60 = tpu.dynamic_rotate %3 by %c7_i32 dim 0 : vector<16x128xf32>, i32 -> vector<16x128xf32>
    %61 = vector.broadcast %59 : vector<1x128xf32> to vector<16x128xf32>
    %62 = arith.mulf %61, %60 : vector<16x128xf32>
    %63 = arith.addf %58, %62 : vector<16x128xf32>
    %64 = vector.extract_strided_slice %5 {offsets = [10, 0], sizes = [1, 128], strides = [1, 1]} : vector<16x128xf32> to vector<1x128xf32>
    %c6_i32 = arith.constant 6 : i32
    %65 = tpu.dynamic_rotate %3 by %c6_i32 dim 0 : vector<16x128xf32>, i32 -> vector<16x128xf32>
    %66 = vector.broadcast %64 : vector<1x128xf32> to vector<16x128xf32>
    %67 = arith.mulf %66, %65 : vector<16x128xf32>
    %68 = arith.addf %63, %67 : vector<16x128xf32>
    %69 = vector.extract_strided_slice %5 {offsets = [11, 0], sizes = [1, 128], strides = [1, 1]} : vector<16x128xf32> to vector<1x128xf32>
    %c5_i32 = arith.constant 5 : i32
    %70 = tpu.dynamic_rotate %3 by %c5_i32 dim 0 : vector<16x128xf32>, i32 -> vector<16x128xf32>
    %71 = vector.broadcast %69 : vector<1x128xf32> to vector<16x128xf32>
    %72 = arith.mulf %71, %70 : vector<16x128xf32>
    %73 = arith.addf %68, %72 : vector<16x128xf32>
    %74 = vector.extract_strided_slice %5 {offsets = [12, 0], sizes = [1, 128], strides = [1, 1]} : vector<16x128xf32> to vector<1x128xf32>
    %c4_i32 = arith.constant 4 : i32
    %75 = tpu.dynamic_rotate %3 by %c4_i32 dim 0 : vector<16x128xf32>, i32 -> vector<16x128xf32>
    %76 = vector.broadcast %74 : vector<1x128xf32> to vector<16x128xf32>
    %77 = arith.mulf %76, %75 : vector<16x128xf32>
    %78 = arith.addf %73, %77 : vector<16x128xf32>
    %79 = vector.extract_strided_slice %5 {offsets = [13, 0], sizes = [1, 128], strides = [1, 1]} : vector<16x128xf32> to vector<1x128xf32>
    %c3_i32 = arith.constant 3 : i32
    %80 = tpu.dynamic_rotate %3 by %c3_i32 dim 0 : vector<16x128xf32>, i32 -> vector<16x128xf32>
    %81 = vector.broadcast %79 : vector<1x128xf32> to vector<16x128xf32>
    %82 = arith.mulf %81, %80 : vector<16x128xf32>
    %83 = arith.addf %78, %82 : vector<16x128xf32>
    %84 = vector.extract_strided_slice %5 {offsets = [14, 0], sizes = [1, 128], strides = [1, 1]} : vector<16x128xf32> to vector<1x128xf32>
    %c2_i32 = arith.constant 2 : i32
    %85 = tpu.dynamic_rotate %3 by %c2_i32 dim 0 : vector<16x128xf32>, i32 -> vector<16x128xf32>
    %86 = vector.broadcast %84 : vector<1x128xf32> to vector<16x128xf32>
    %87 = arith.mulf %86, %85 : vector<16x128xf32>
    %88 = arith.addf %83, %87 : vector<16x128xf32>
    %89 = vector.extract_strided_slice %5 {offsets = [15, 0], sizes = [1, 128], strides = [1, 1]} : vector<16x128xf32> to vector<1x128xf32>
    %c1_i32 = arith.constant 1 : i32
    %90 = tpu.dynamic_rotate %3 by %c1_i32 dim 0 : vector<16x128xf32>, i32 -> vector<16x128xf32>
    %91 = vector.broadcast %89 : vector<1x128xf32> to vector<16x128xf32>
    %92 = arith.mulf %91, %90 : vector<16x128xf32>
    %93 = arith.addf %88, %92 : vector<16x128xf32>
    %94 = math.absf %93 : vector<16x128xf32>
    %cst_11 = arith.constant dense<0.000000e+00> : vector<16x128xf32>
    %95 = tpu.matmul %94, %6, %cst_11 {dimension_numbers = #tpu.dot_dimension_numbers<[1], [0], [0], [1], [0, 0, 1, 1], [], []>} : vector<16x128xf32>, vector<128x128xf32>, vector<16x128xf32> -> vector<16x128xf32>
    %96 = arith.addf %1, %95 : vector<16x128xf32>
    %97 = vector.extract_strided_slice %15 {offsets = [0, 0], sizes = [1, 128], strides = [1, 1]} : vector<2x128xf32> to vector<1x128xf32>
    %cst_12 = arith.constant 1.000000e-24 : f32
    %98 = vector.broadcast %cst_12 : f32 to vector<1x128xf32>
    %99 = arith.maximumf %97, %98 : vector<1x128xf32>
    %100 = math.rsqrt %99 : vector<1x128xf32>
    %101 = vector.extract_strided_slice %15 {offsets = [1, 0], sizes = [1, 128], strides = [1, 1]} : vector<2x128xf32> to vector<1x128xf32>
    %cst_13 = arith.constant 1.000000e-24 : f32
    %102 = vector.broadcast %cst_13 : f32 to vector<1x128xf32>
    %103 = arith.maximumf %101, %102 : vector<1x128xf32>
    %104 = math.rsqrt %103 : vector<1x128xf32>
    %105 = arith.mulf %100, %104 : vector<1x128xf32>
    %cst_14 = arith.constant 2.500000e-01 : f32
    %106 = vector.broadcast %cst_14 : f32 to vector<1x128xf32>
    %107 = arith.mulf %105, %106 : vector<1x128xf32>
    %108 = vector.broadcast %107 : vector<1x128xf32> to vector<16x128xf32>
    %109 = arith.mulf %96, %108 : vector<16x128xf32>
    %c0_15 = arith.constant 0 : index
    %c0_16 = arith.constant 0 : index
    %110 = vector.load %arg4[%c0_15, %c0_16] : memref<128x128xf32, #tpu.memory_space<vmem>>, vector<128x128xf32>
    %cst_17 = arith.constant dense<0.000000e+00> : vector<16x128xf32>
    %111 = tpu.matmul %109, %110, %cst_17 {dimension_numbers = #tpu.dot_dimension_numbers<[1], [0], [0], [1], [0, 0, 1, 1], [], []>} : vector<16x128xf32>, vector<128x128xf32>, vector<16x128xf32> -> vector<16x128xf32>
    %112 = vector.shape_cast %111 : vector<16x128xf32> to vector<1x16x128xf32>
    %c0_18 = arith.constant 0 : index
    %c0_19 = arith.constant 0 : index
    %c0_20 = arith.constant 0 : index
    %113 = vector.load %arg5[%c0_18, %c0_19, %c0_20] : memref<1x16x128xf32, #tpu.memory_space<vmem>>, vector<1x16x128xf32>
    tpu.vector_store %arg5[%c0_18, %c0_19, %c0_20], %112 {strides = array<i32>} : memref<1x16x128xf32, #tpu.memory_space<vmem>>, vector<1x16x128xf32>,
    return
  }
  func.func @transform_0(%arg0: i32) -> (i32, i32, i32) {
    %c0_i32 = arith.constant 0 : i32
    %c0_i32_0 = arith.constant 0 : i32
    %c0_i32_1 = arith.constant 0 : i32
    return %arg0, %c0_i32, %c0_i32_0 : i32, i32, i32
  }
  func.func @transform_1(%arg0: i32) -> (i32, i32, i32) {
    %c0_i32 = arith.constant 0 : i32
    %c0_i32_0 = arith.constant 0 : i32
    %c0_i32_1 = arith.constant 0 : i32
    return %arg0, %c0_i32, %c0_i32_0 : i32, i32, i32
  }
  func.func @transform_2(%arg0: i32) -> (i32, i32) {
    %c0_i32 = arith.constant 0 : i32
    %c0_i32_0 = arith.constant 0 : i32
    %c0_i32_1 = arith.constant 0 : i32
    return %c0_i32, %c0_i32_0 : i32, i32
  }
  func.func @transform_3(%arg0: i32) -> (i32, i32) {
    %c0_i32 = arith.constant 0 : i32
    %c0_i32_0 = arith.constant 0 : i32
    %c0_i32_1 = arith.constant 0 : i32
    return %c0_i32, %c0_i32_0 : i32, i32
  }
  func.func @transform_4(%arg0: i32) -> (i32, i32, i32) {
    %c0_i32 = arith.constant 0 : i32
    %c0_i32_0 = arith.constant 0 : i32
    %c0_i32_1 = arith.constant 0 : i32
    return %arg0, %c0_i32, %c0_i32_0 : i32, i32, i32
  }
}

</mosaic_0001>

<bundles_post_ra>
// kernel: circorr2_forward.1
= control target key start
LH: loop header
LB: loop body
LE: loop exit
PB: predicated region body
PF: predicated region fallthrough
CT: control target
= control target key end

     0   :  { %v82_v0 = vlaneseq  ;;  %vm55_vm6 = vcmask 1040384   ;;  %s574_s2 = inlined_call_operand.vmem [shape: f32[128,128], index: 2, kind: input, shape index: {}]   ;;  %s575_s0 = inlined_call_operand.vmem [shape: f32[1,16,128], index: 0, kind: input, shape index: {}]   ;;  %s576_s1 = inlined_call_operand.vmem [shape: f32[1,16,128], index: 1, kind: input, shape index: {}]   ;;  %s577_s3 = inlined_call_operand.vmem [shape: f32[128,128], index: 3, kind: input, shape index: {}]   ;;  %s578_s4 = inlined_call_operand.vmem [shape: f32[1,16,128], index: 4, kind: output, shape index: {}]  }
   0x1   :  { %v36_v1 = vld [vmem:[%s574_s2 + $0x78] sm:$0xff]  ;;  %v35_v2 = vld [vmem:[%s574_s2 + $0x70] sm:$0xff]  ;;  %v34_v4 = vld [vmem:[%s574_s2 + $0x68] sm:$0xff] }
   0x2   :  { %57 = vmatpush.msra.mxu0 %v36_v1  ;;  %281 = vmatpush.msra.mxu3 %v36_v1  ;;  %v330_v3 = vshrl.u32 %v82_v0, 7  ;;  %v33_v5 = vld [vmem:[%s574_s2 + $0x60] sm:$0xff]  ;;  %v346_v7 = vld [vmem:[%s575_s0 + $0x8] sm:$0xff]  ;;  %v32_v8 = vld [vmem:[%s574_s2 + $0x58] sm:$0xff] }
   0x3   :  { %194 = vmatpush.msra.mxu1 %v36_v1  ;;  %v341_v6 = vld [vmem:[%s575_s0] sm:$0xff]  ;;  %v362_v10 = vld [vmem:[%s576_s1 + $0x8] sm:$0xff]  ;;  %v38_v12 = vmul.f32 %v346_v7, %v346_v7  ;;  %v81_v14 = vrot.slane %v346_v7, 1  ;;  %v31_v19 = vld [vmem:[%s574_s2 + $0x50] sm:$0xff]  ;;  %v93_v27 = vrot.slane %v346_v7, 2  ;;  %v103_v44 = vrot.slane %v346_v7, 3 }
   0x4   :  { %58 = vmatpush.msra.mxu0 %v35_v2  ;;  %282 = vmatpush.msra.mxu3 %v35_v2  ;;  %vm84_vm0 = vcmp.lt.s32.totalorder %v330_v3, 7  ;;  %vm94_vm1 = vcmp.lt.s32.totalorder %v330_v3, 6  ;;  %vm104_vm2 = vcmp.lt.s32.totalorder %v330_v3, 5  ;;  %v357_v9 = vld [vmem:[%s576_s1] sm:$0xff]  ;;  %v37_v11 = vmul.f32 %v341_v6, %v341_v6  ;;  %v30_v28 = vld [vmem:[%s574_s2 + $0x48] sm:$0xff]  ;;  %v28_v46 = vld [vmem:[%s574_s2 + $0x38] sm:$0xff] }
   0x5   :  { %195 = vmatpush.msra.mxu1 %v35_v2  ;;  %v80_v13 = vrot.slane %v341_v6, 1  ;;  %vm114_vm3 = vcmp.lt.s32.totalorder %v330_v3, 4  ;;  %v46_v15 = vmul.f32 %v357_v9, %v357_v9  ;;  %v47_v16 = vmul.f32 %v362_v10, %v362_v10  ;;  %v29_v37 = vld [vmem:[%s574_s2 + $0x40] sm:$0xff]  ;;  %v27_v55 = vld [vmem:[%s574_s2 + $0x30] sm:$0xff]  ;;  %v26_v0 = vld [vmem:[%s574_s2 + $0x28] sm:$0xff] }
   0x6   :  { %59 = vmatpush.msra.mxu0 %v34_v4  ;;  %283 = vmatpush.msra.mxu3 %v34_v4  ;;  %v77_v17 = vperm.slane %v357_v9, 0  ;;  %v87_v18 = vperm.slane %v357_v9, 1  ;;  %v39_v20 = vadd.f32 %v38_v12, %v37_v11  ;;  %v92_v23 = vrot.slane %v341_v6, 2 }
   0x7   :  { %196 = vmatpush.msra.mxu1 %v34_v4  ;;  %v382_v21 = vsel %vm84_vm0, %v80_v13, %v81_v14  ;;  %v386_v22 = vsel %vm84_vm0, %v81_v14, %v80_v13  ;;  %v48_v24 = vadd.f32 %v47_v16, %v46_v15  ;;  %vm124_vm4 = vcmp.lt.s32.totalorder %v330_v3, 3  ;;  %v25_v14 = vld [vmem:[%s574_s2 + $0x20] sm:$0xff] }
   0x8   :  { %60 = vmatpush.msra.mxu0 %v33_v5  ;;  %284 = vmatpush.msra.mxu3 %v33_v5  ;;  %v78_v25 = vmul.f32 %v77_v17, %v341_v6  ;;  %v79_v26 = vmul.f32 %v77_v17, %v346_v7  ;;  %v40_v29 = vrot.slane %v39_v20, 4  ;;  %v88_v30 = vmul.f32 %v87_v18, %v382_v21 }
   0x9   :  { %197 = vmatpush.msra.mxu1 %v33_v5  ;;  %v89_v31 = vmul.f32 %v87_v18, %v386_v22  ;;  %v97_v32 = vperm.slane %v357_v9, 2  ;;  %v49_v33 = vrot.slane %v48_v24, 4  ;;  %v401_v34 = vsel %vm94_vm1, %v92_v23, %v93_v27 }
   0xa   :  { %61 = vmatpush.msra.mxu0 %v32_v8  ;;  %285 = vmatpush.msra.mxu3 %v32_v8  ;;  %v405_v35 = vsel %vm94_vm1, %v93_v27, %v92_v23  ;;  %v102_v36 = vrot.slane %v341_v6, 3  ;;  %v41_v38 = vadd.f32 %v40_v29, %v39_v20  ;;  %v90_v39 = vadd.f32 %v88_v30, %v78_v25 }
   0xb   :  { %198 = vmatpush.msra.mxu1 %v32_v8  ;;  %v91_v40 = vadd.f32 %v89_v31, %v79_v26  ;;  %v98_v41 = vmul.f32 %v97_v32, %v401_v34  ;;  %vm134_vm5 = vcmp.lt.s32.totalorder %v330_v3, 2  ;;  %v50_v42 = vadd.f32 %v49_v33, %v48_v24  ;;  %v24_v24 = vld [vmem:[%s574_s2 + $0x18] sm:$0xff]  ;;  %v23_v33 = vld [vmem:[%s574_s2 + $0x10] sm:$0xff] }
   0xc   :  { %62 = vmatpush.msra.mxu0 %v31_v19  ;;  %286 = vmatpush.msra.mxu3 %v31_v19  ;;  %v99_v43 = vmul.f32 %v97_v32, %v405_v35  ;;  %v107_v45 = vperm.slane %v357_v9, 3  ;;  %v42_v47 = vrot.slane %v41_v38, 2  ;;  %v112_v49 = vrot.slane %v341_v6, 4 }
   0xd   :  { %199 = vmatpush.msra.mxu1 %v31_v19  ;;  %v100_v48 = vadd.f32 %v98_v41, %v90_v39  ;;  %v113_v50 = vrot.slane %v346_v7, 4  ;;  %v51_v51 = vrot.slane %v50_v42, 2  ;;  %v423_v53 = vsel %vm104_vm2, %v102_v36, %v103_v44 }
   0xe   :  { %63 = vmatpush.msra.mxu0 %v30_v28  ;;  %287 = vmatpush.msra.mxu3 %v30_v28  ;;  %v101_v52 = vadd.f32 %v99_v43, %v91_v40  ;;  %v427_v54 = vsel %vm104_vm2, %v103_v44, %v102_v36  ;;  %v43_v56 = vadd.f32 %v42_v47, %v41_v38  ;;  %v117_v62 = vperm.slane %v357_v9, 4  ;;  %v22_v44 = vld [vmem:[%s574_s2 + $0x8] sm:$0xff] }
   0xf   :  { %200 = vmatpush.msra.mxu1 %v30_v28  ;;  %v108_v57 = vmul.f32 %v107_v45, %v423_v53  ;;  %v109_v58 = vmul.f32 %v107_v45, %v427_v54  ;;  %v436_v59 = vsel %vm114_vm3, %v112_v49, %v113_v50  ;;  %v52_v60 = vadd.f32 %v51_v51, %v50_v42 }
  0x10   :  { %64 = vmatpush.msra.mxu0 %v29_v37  ;;  %288 = vmatpush.msra.mxu3 %v29_v37  ;;  %v440_v61 = vsel %vm114_vm3, %v113_v50, %v112_v49  ;;  %v122_v63 = vrot.slane %v341_v6, 5  ;;  %v44_v1 = vrot.slane %v43_v56, 1  ;;  %v123_v5 = vrot.slane %v346_v7, 5 }
  0x11   :  { %201 = vmatpush.msra.mxu1 %v29_v37  ;;  %v110_v2 = vadd.f32 %v108_v57, %v100_v48  ;;  %v111_v4 = vadd.f32 %v109_v58, %v101_v52  ;;  %v53_v8 = vrot.slane %v52_v60, 1  ;;  %v118_v11 = vmul.f32 %v117_v62, %v436_v59 }
  0x12   :  { %65 = vmatpush.msra.mxu0 %v28_v46  ;;  %289 = vmatpush.msra.mxu3 %v28_v46  ;;  %v119_v12 = vmul.f32 %v117_v62, %v440_v61  ;;  %v127_v13 = vperm.slane %v357_v9, 5  ;;  %v456_v15 = vsel %vm124_vm4, %v122_v63, %v123_v5  ;;  %v460_v16 = vsel %vm124_vm4, %v123_v5, %v122_v63 }
  0x13   :  { %202 = vmatpush.msra.mxu1 %v28_v46  ;;  %v132_v17 = vrot.slane %v341_v6, 6  ;;  %vm144_vm7 = vcmp.lt.s32.totalorder %v330_v3, 1  ;;  %v45_v18 = vadd.f32 %v44_v1, %v43_v56  ;;  %v120_v19 = vadd.f32 %v118_v11, %v110_v2 }
  0x14   :  { %66 = vmatpush.msra.mxu0 %v27_v55  ;;  %290 = vmatpush.msra.mxu3 %v27_v55  ;;  %v121_v20 = vadd.f32 %v119_v12, %v111_v4  ;;  %v133_v23 = vrot.slane %v346_v7, 6  ;;  %v128_v25 = vmul.f32 %v127_v13, %v456_v15  ;;  %v129_v26 = vmul.f32 %v127_v13, %v460_v16 }
  0x15   :  { %203 = vmatpush.msra.mxu1 %v27_v55  ;;  %v137_v27 = vperm.slane %v357_v9, 6  ;;  %v142_v28 = vrot.slane %v341_v6, 7  ;;  %v54_v29 = vadd.f32 %v53_v8, %v52_v60  ;;  %v143_v32 = vrot.slane %v346_v7, 7 }
  0x16   :  { %67 = vmatpush.msra.mxu0 %v26_v0  ;;  %291 = vmatpush.msra.mxu3 %v26_v0  ;;  %v474_v30 = vsel %vm134_vm5, %v132_v17, %v133_v23  ;;  %v478_v31 = vsel %vm134_vm5, %v133_v23, %v132_v17  ;;  %v130_v36 = vadd.f32 %v128_v25, %v120_v19  ;;  %v147_v42 = vperm.slane %v357_v9, 7  ;;  %v21_v9 = vld [vmem:[%s574_s2] sm:$0xff] }
  0x17   :  { %204 = vmatpush.msra.mxu1 %v26_v0  ;;  %v131_v37 = vadd.f32 %v129_v26, %v121_v20  ;;  %v138_v38 = vmul.f32 %v137_v27, %v474_v30  ;;  %v139_v39 = vmul.f32 %v137_v27, %v478_v31  ;;  %v145_v40 = vsel %vm144_vm7, %v142_v28, %v143_v32 }
  0x18   :  { %68 = vmatpush.msra.mxu0 %v25_v14  ;;  %292 = vmatpush.msra.mxu3 %v25_v14  ;;  %v146_v41 = vsel %vm144_vm7, %v143_v32, %v142_v28  ;;  %v152_v43 = vperm.slane %v362_v10, 0  ;;  %v157_v47 = vperm.slane %v362_v10, 1  ;;  %v162_v48 = vperm.slane %v362_v10, 2  ;;  %v247_v32 = vld [vmem:[%s577_s3 + $0x58] sm:$0xff] }
  0x19   :  { %205 = vmatpush.msra.mxu1 %v25_v14  ;;  %v140_v45 = vadd.f32 %v138_v38, %v130_v36  ;;  %v141_v46 = vadd.f32 %v139_v39, %v131_v37  ;;  %v148_v49 = vmul.f32 %v147_v42, %v145_v40  ;;  %v149_v3 = vmul.f32 %v147_v42, %v146_v41  ;;  %v245_v36 = vld [vmem:[%s577_s3 + $0x48] sm:$0xff]  ;;  %v244_v37 = vld [vmem:[%s577_s3 + $0x40] sm:$0xff]  ;;  %v243_v38 = vld [vmem:[%s577_s3 + $0x38] sm:$0xff] }
  0x1a   :  { %69 = vmatpush.msra.mxu0 %v24_v24  ;;  %293 = vmatpush.msra.mxu3 %v24_v24  ;;  %v153_v50 = vmul.f32 %v152_v43, %v346_v7  ;;  %v56_v51 = vsel %vm55_vm6, %v45_v18, %v54_v29  ;;  %v154_v52 = vmul.f32 %v152_v43, %v341_v6  ;;  %v167_v56 = vperm.slane %v362_v10, 3  ;;  %v242_v39 = vld [vmem:[%s577_s3 + $0x30] sm:$0xff]  ;;  %v239_v42 = vld [vmem:[%s577_s3 + $0x18] sm:$0xff] }
  0x1b   :  { %206 = vmatpush.msra.mxu1 %v24_v24  ;;  %v158_v55 = vmul.f32 %v157_v47, %v386_v22  ;;  %v150_v57 = vadd.f32 %v148_v49, %v140_v45  ;;  %v151_v58 = vadd.f32 %v149_v3, %v141_v46  ;;  %v159_v60 = vmul.f32 %v157_v47, %v382_v21  ;;  %v238_v43 = vld [vmem:[%s577_s3 + $0x10] sm:$0xff]  ;;  %v236_v45 = vld [vmem:[%s577_s3] sm:$0xff] }
  0x1c   :  { %70 = vmatpush.msra.mxu0 %v23_v33  ;;  %294 = vmatpush.msra.mxu3 %v23_v33  ;;  %v164_v7 = vmul.f32 %v162_v48, %v401_v34  ;;  %v172_v6 = vperm.slane %v362_v10, 4  ;;  %v163_v22 = vmul.f32 %v162_v48, %v405_v35  ;;  %v169_v0 = vmul.f32 %v167_v56, %v423_v53 }
  0x1d   :  { %207 = vmatpush.msra.mxu1 %v23_v33  ;;  %v155_v62 = vadd.f32 %v153_v50, %v150_v57  ;;  %v156_v63 = vadd.f32 %v154_v52, %v151_v58  ;;  %v177_v4 = vperm.slane %v362_v10, 5  ;;  %v168_v21 = vmul.f32 %v167_v56, %v427_v54  ;;  %v246_v33 = vld [vmem:[%s577_s3 + $0x50] sm:$0xff] }
  0x1e   :  { %71 = vmatpush.msra.mxu0 %v22_v44  ;;  %295 = vmatpush.msra.mxu3 %v22_v44  ;;  %v182_v34 = vperm.slane %v362_v10, 6  ;;  %v174_v8 = vmul.f32 %v172_v6, %v436_v59  ;;  %v173_v12 = vmul.f32 %v172_v6, %v440_v61  ;;  %v187_v35 = vperm.slane %v362_v10, 7 }
  0x1f   :  { %208 = vmatpush.msra.mxu1 %v22_v44  ;;  %v160_v1 = vadd.f32 %v158_v55, %v155_v62  ;;  %v161_v2 = vadd.f32 %v159_v60, %v156_v63  ;;  %v179_v53 = vmul.f32 %v177_v4, %v456_v15  ;;  %v178_v17 = vmul.f32 %v177_v4, %v460_v16  ;;  %v251_v15 = vld [vmem:[%s577_s3 + $0x78] sm:$0xff]  ;;  %v250_v16 = vld [vmem:[%s577_s3 + $0x70] sm:$0xff]  ;;  %v237_v44 = vld [vmem:[%s577_s3 + $0x8] sm:$0xff] }
  0x20   :  { %72 = vmatpush.msra.mxu0 %v21_v9  ;;  %296 = vmatpush.msra.mxu3 %v21_v9  ;;  %v184_v19 = vmul.f32 %v182_v34, %v474_v30  ;;  %v183_v20 = vmul.f32 %v182_v34, %v478_v31  ;;  %v189_v24 = vmul.f32 %v187_v35, %v145_v40  ;;  %v249_v30 = vld [vmem:[%s577_s3 + $0x68] sm:$0xff]  ;;  %v248_v31 = vld [vmem:[%s577_s3 + $0x60] sm:$0xff] }
  0x21   :  { %73 = vmatmul.f32.vlgmr.msra.gmra.mxu0 %v56_v51  ;;  %209 = vmatpush.msra.mxu1 %v21_v9  ;;  %v166_v5 = vadd.f32 %v164_v7, %v161_v2  ;;  %v165_v11 = vadd.f32 %v163_v22, %v160_v1  ;;  %v188_v25 = vmul.f32 %v187_v35, %v146_v41  ;;  %v241_v40 = vld [vmem:[%s577_s3 + $0x28] sm:$0xff]  ;;  %v240_v41 = vld [vmem:[%s577_s3 + $0x20] sm:$0xff] }
  0x22   :  { %252 = vmatpush.msra.mxu2 %v251_v15 }
  0x23   :  { %v171_v13 = vadd.f32 %v169_v0, %v166_v5  ;;  %v170_v14 = vadd.f32 %v168_v21, %v165_v11 }
  0x24   :  { %253 = vmatpush.msra.mxu2 %v250_v16 }
  0x25   :  { %v176_v18 = vadd.f32 %v174_v8, %v171_v13  ;;  %v175_v54 = vadd.f32 %v173_v12, %v170_v14 }
  0x26   :  { %254 = vmatpush.msra.mxu2 %v249_v30 }
  0x27   :  { %v181_v23 = vadd.f32 %v179_v53, %v176_v18  ;;  %v180_v59 = vadd.f32 %v178_v17, %v175_v54 }
  0x28   :  { %255 = vmatpush.msra.mxu2 %v248_v31 }
  0x29   :  { %v186_v26 = vadd.f32 %v184_v19, %v181_v23  ;;  %v185_v61 = vadd.f32 %v183_v20, %v180_v59 }
  0x2a   :  { %256 = vmatpush.msra.mxu2 %v247_v32 }
  0x2b   :  { %v191_v27 = vadd.f32 %v189_v24, %v186_v26  ;;  %v190_v10 = vadd.f32 %v188_v25, %v185_v61 }
  0x2c   :  { %257 = vmatpush.msra.mxu2 %v246_v33 }
  0x2d   :  { %v193_v28 = vand.u32 2147483647, %v191_v27  ;;  %v192_v29 = vand.u32 2147483647, %v190_v10 }
  0x2e   :  { %258 = vmatpush.msra.mxu2 %v245_v36 }
  0x2f   :  { %213 = vmatmul.f32.vlgmr.msra.gmra.mxu3 %v193_v28  ;;  %210 = vmatmul.f32.vlgmr.msra.gmra.mxu1 %v192_v29 }
  0x30   :  { %259 = vmatpush.msra.mxu2 %v244_v37 }
  0x32   :  { %260 = vmatpush.msra.mxu2 %v243_v38 }
  0x34   :  { %261 = vmatpush.msra.mxu2 %v242_v39 }
  0x36   :  { %262 = vmatpush.msra.mxu2 %v241_v40 }
  0x38   :  { %263 = vmatpush.msra.mxu2 %v240_v41 }
  0x3a   :  { %264 = vmatpush.msra.mxu2 %v239_v42 }
  0x3c   :  { %265 = vmatpush.msra.mxu2 %v238_v43 }
  0x3e   :  { %266 = vmatpush.msra.mxu2 %v237_v44 }
  0x40   :  { %267 = vmatpush.msra.mxu2 %v236_v45 }
  0x9e   :  { %v74_v46 = vpop.f32.mrf.mxu0 }
  0x9f   :  { %v217_v47 = vmax.f32 %v74_v46, 1e-24 }
  0xa1   :  { %297 = vrsqrt.f32 %v217_v47  ;;  %vm224_vm9 = vweird.f32 %v217_v47 }
  0xa7   :  { %v298_v48 = vpop.eup %297 }
  0xa8   :  { %v219_v49 = vmul.f32 %v298_v48, %v217_v47  ;;  %vm225_vm8 = vweird.f32 %v298_v48 }
  0xa9   :  { %vm226_vm10 = vmor %vm224_vm9, %vm225_vm8 }
  0xaa   :  { %v220_v3 = vmul.f32 %v298_v48, %v219_v49 }
  0xac   :  { %v221_v50 = vmul.f32 0.5, %v220_v3  ;;  %v211_v58 = vpop.f32.mrf.mxu1 }
  0xae   :  { %v222_v9 = vsub.f32 1.5, %v221_v50 }
  0xb0   :  { %v223_v51 = vmul.f32 %v298_v48, %v222_v9 }
  0xb2   :  { %v227_v52 = vsel %vm226_vm10, %v298_v48, %v223_v51  ;;  %v214_v62 = vpop.f32.mrf.mxu3 }
  0xb3   :  { %v229_v55 = vrot.slane %v227_v52, 1 }
  0xb5   :  { %v231_v56 = vmul.f32 %v229_v55, %v227_v52 }
  0xb7   :  { %v232_v57 = vmul.f32 0.25, %v231_v56 }
  0xb9   :  { %v233_v60 = vperm.slane %v232_v57, 0 }
  0xbb   :  { %v234_v7 = vmul.f32 %v233_v60, %v211_v58  ;;  %v235_v63 = vmul.f32 %v233_v60, %v214_v62 }
  0xbd   :  { %268 = vmatmul.f32.vlgmr.msra.gmra.mxu2 %v234_v7 }
  0xc5   :  { %271 = vmatmul.f32.gmra.mxu2 %v235_v63 }
 0x140   :  { %v269_v6 = vpop.f32.mrf.mxu2 }
 0x141   :  { %275 = vst [vmem:[%s578_s4] sm:$0xff] %v269_v6 }
 0x148   :  { %v272_v22 = vpop.f32.mrf.mxu2 }
 0x149   :  { %276 = vst [vmem:[%s578_s4 + $0x8] sm:$0xff] %v272_v22 }

</bundles_post_ra>
